<compile_context>
chip_gen: v7x
topology: tpu7x:2x2x1
jax: 0.10.0
libtpu: 0.0.40
codegen_flags: <defaults>
</compile_context>

<pallas_src>
import jax
import jax.numpy as jnp
from jax.experimental import pallas as pl
from jax.experimental.pallas import tpu as pltpu

IN_FEATURES = 63          # nn.Flatten of a (B, 21, 3) landmark tensor -> 63
IN_PAD = 64               # pad K of the first matmul to a sublane-friendly size (pad col = bias col)
HIDDEN = 128
NUM_CLASSES = 10          # len(list_label) from hand_gesture.yaml (synthetic choice)
OUT_PAD = 128             # lane-dense / MXU-aligned output width
BN_EPS = 1e-5
MAX_TILE_B = 1024         # ~85% of HBM roofline territory; ~2-3 MB VMEM at this tile


def _round_up(x, m):
    return (x + m - 1) // m * m


def _choose_tile_b(B):
    """Pick a batch tile: big (HBM roofline), >=2 grid steps when possible (v7x has
    2 TensorCores), and minimal batch-padding waste."""
    b8 = _round_up(B, 8)
    if b8 <= 16:
        return b8                           # tiny batch: single small tile
    # Split into (at least) two steps, capped by MAX_TILE_B.
    return min(MAX_TILE_B, _round_up((b8 + 1) // 2, 8))


def mlp_kernel(x_ref, w1_ref, w2_ref, w3_ref, w4_ref, w5_ref, bias_ref, o_ref, xpad_ref):
    # x_ref: [TILE_B, 63] f32 block; xpad_ref: [TILE_B, 64] bf16 VMEM scratch.
    # In-kernel pad 63 -> 64 and f32 -> bf16 cast (free VPU/vst filler in a DMA-bound
    # kernel). The padded column is 1.0 so that w1's last row (= b1) realizes the
    # layer-1 bias inside the matmul.
    xpad_ref[:, IN_FEATURES:IN_PAD] = jnp.ones(
        (xpad_ref.shape[0], IN_PAD - IN_FEATURES), jnp.bfloat16)
    xpad_ref[:, :IN_FEATURES] = x_ref[...].astype(jnp.bfloat16)
    h0 = xpad_ref[...]

    biases = bias_ref[...]

    def dense_relu(h_bf16, w_ref, bias_row):
        acc = jnp.dot(h_bf16, w_ref[...], preferred_element_type=jnp.float32)
        if bias_row is not None:
            acc = acc + biases[bias_row:bias_row + 1, :]
        return jnp.maximum(acc, 0.0)

    # Linear(63,128)+ReLU   (b1 folded into w1's pad row; BN folded into layer 2)
    h = dense_relu(h0, w1_ref, None)
    # Linear(128,128)+ReLU  (BN-folded weights/bias; Dropout(0.4) identity in eval)
    h = dense_relu(h.astype(jnp.bfloat16), w2_ref, 0)
    # Linear(128,128)+ReLU  (Dropout(0.4) identity)
    h = dense_relu(h.astype(jnp.bfloat16), w3_ref, 1)
    # Linear(128,128)+ReLU  (Dropout(0.6) identity)
    h = dense_relu(h.astype(jnp.bfloat16), w4_ref, 2)
    # Final Linear(128, NUM_CLASSES) padded to 128 columns -> lane-dense bf16 store.
    logits = jnp.dot(h.astype(jnp.bfloat16), w5_ref[...],
                     preferred_element_type=jnp.float32) + biases[3:4, :]
    o_ref[...] = logits.astype(o_ref.dtype)
    # TODO(synk): Dropout is a no-op here (inference semantics); training-mode masking not implemented.


def prepare_params(p):
    """One-time (host/JAX-side) param prep: BN fold, b1 fold, padding, bias packing, bf16 cast."""
    # BatchNorm1d (eval) fold into layer 2:  bn(h) = a*h + c  with
    #   a = gamma / sqrt(var + eps),  c = beta - mean * a
    # so  bn(h) @ w2 + b2 = h @ (a[:,None] * w2) + (c @ w2 + b2).   (ReLU sits before BN.)
    a = p["gamma"] * jax.lax.rsqrt(p["var"] + BN_EPS)            # [1, 128]
    c = p["beta"] - p["mean"] * a                                 # [1, 128]
    w2f = a.reshape(HIDDEN, 1) * p["w2"]                          # scale input rows of w2
    b2f = c @ p["w2"] + p["b2"]                                   # [1, 128]

    # w1 padded 63 -> 64 rows; row 63 holds b1 (the kernel feeds a 1.0 in x's pad column).
    w1p = jnp.zeros((IN_PAD, HIDDEN), jnp.float32)
    w1p = w1p.at[:IN_FEATURES, :].set(p["w1"]).at[IN_FEATURES, :].set(p["b1"][0])

    w5p = jnp.zeros((HIDDEN, OUT_PAD), jnp.float32).at[:, :NUM_CLASSES].set(p["w5"])
    b5p = jnp.zeros((OUT_PAD,), jnp.float32).at[:NUM_CLASSES].set(p["b5"][0])

    # Packed biases (one DMA): row 0 = BN-folded b2, row 1 = b3, row 2 = b4, row 3 = padded b5.
    biases = jnp.zeros((8, HIDDEN), jnp.float32)
    biases = (biases.at[0].set(b2f[0])
                    .at[1].set(p["b3"][0])
                    .at[2].set(p["b4"][0])
                    .at[3].set(b5p))

    return {
        "w1": w1p.astype(jnp.bfloat16),
        "w2": w2f.astype(jnp.bfloat16),
        "w3": p["w3"].astype(jnp.bfloat16),
        "w4": p["w4"].astype(jnp.bfloat16),
        "w5": w5p.astype(jnp.bfloat16),
        "biases": biases,
    }


def neural_network_forward(x, prep, tile_b=None):
    """x: [B, 63] float32 -> logits [B, NUM_CLASSES] float32."""
    B = x.shape[0]
    if tile_b is None:
        tile_b = _choose_tile_b(B)
    b_pad = _round_up(B, tile_b)

    # Only pad the batch axis (rows) when needed; feature pad + bf16 cast happen in-kernel.
    if b_pad != B:
        x_in = jnp.zeros((b_pad, IN_FEATURES), x.dtype).at[:B].set(x)
    else:
        x_in = x

    const = lambda i: (0, 0)   # weights/biases: same block every step -> VMEM-resident
    out = pl.pallas_call(
        mlp_kernel,
        out_shape=jax.ShapeDtypeStruct((b_pad, OUT_PAD), jnp.bfloat16),
        grid_spec=pltpu.PrefetchScalarGridSpec(
            num_scalar_prefetch=0,
            grid=(b_pad // tile_b,),
            in_specs=[
                pl.BlockSpec((tile_b, IN_FEATURES), lambda i: (i, 0)),  # x tile (unpadded 63)
                pl.BlockSpec((IN_PAD, HIDDEN), const),                  # w1 (padded, b1 in row 63)
                pl.BlockSpec((HIDDEN, HIDDEN), const),                  # w2 (BN-folded)
                pl.BlockSpec((HIDDEN, HIDDEN), const),                  # w3
                pl.BlockSpec((HIDDEN, HIDDEN), const),                  # w4
                pl.BlockSpec((HIDDEN, OUT_PAD), const),                 # w5 (padded)
                pl.BlockSpec((8, HIDDEN), const),                       # packed biases
            ],
            out_specs=pl.BlockSpec((tile_b, OUT_PAD), lambda i: (i, 0)),
            scratch_shapes=[pltpu.VMEM((tile_b, IN_PAD), jnp.bfloat16)],
        ),
        compiler_params=pltpu.CompilerParams(
            dimension_semantics=("parallel",)),
    )(x_in, prep["w1"], prep["w2"], prep["w3"], prep["w4"], prep["w5"], prep["biases"])

    # TODO(synk): if the consumer only needs softmax/argmax, fuse it into the kernel and
    # emit a tiny output instead of re-reading the padded logits here.
    return out[:B, :NUM_CLASSES].astype(jnp.float32)


def init_params(key):
    """Deterministic init mirroring PyTorch nn.Linear (uniform +-1/sqrt(fan_in))."""
    def linear(k, fan_in, fan_out):
        kw, kb = jax.random.split(k)
        bound = 1.0 / jnp.sqrt(fan_in)
        w = jax.random.uniform(kw, (fan_in, fan_out), jnp.float32, -bound, bound)
        b = jax.random.uniform(kb, (1, fan_out), jnp.float32, -bound, bound)
        return w, b

    keys = jax.random.split(key, 5)
    w1, b1 = linear(keys[0], IN_FEATURES, HIDDEN)
    w2, b2 = linear(keys[1], HIDDEN, HIDDEN)
    w3, b3 = linear(keys[2], HIDDEN, HIDDEN)
    w4, b4 = linear(keys[3], HIDDEN, HIDDEN)
    w5, b5 = linear(keys[4], HIDDEN, NUM_CLASSES)
    return {
        "w1": w1, "b1": b1,
        # BatchNorm1d(128) defaults: gamma=1, beta=0, running_mean=0, running_var=1
        "gamma": jnp.ones((1, HIDDEN), jnp.float32),
        "beta": jnp.zeros((1, HIDDEN), jnp.float32),
        "mean": jnp.zeros((1, HIDDEN), jnp.float32),
        "var": jnp.ones((1, HIDDEN), jnp.float32),
        "w2": w2, "b2": b2,
        "w3": w3, "b3": b3,
        "w4": w4, "b4": b4,
        "w5": w5, "b5": b5,
    }


def reference_forward(x, p):
    """Pure-JAX f32 reference matching the original module (eval semantics)."""
    h = jnp.maximum(x @ p["w1"] + p["b1"], 0.0)
    h = (h - p["mean"]) / jnp.sqrt(p["var"] + BN_EPS) * p["gamma"] + p["beta"]
    h = jnp.maximum(h @ p["w2"] + p["b2"], 0.0)
    h = jnp.maximum(h @ p["w3"] + p["b3"], 0.0)
    h = jnp.maximum(h @ p["w4"] + p["b4"], 0.0)
    return h @ p["w5"] + p["b5"]


if __name__ == "__main__":
    key = jax.random.PRNGKey(0)
    k_x, k_p = jax.random.split(key)

    B = 8
    # Input corresponds to flattened (B, 21, 3) hand landmarks -> (B, 63)
    x = jax.random.normal(k_x, (B, IN_FEATURES), jnp.float32)
    params = init_params(k_p)
    prep = prepare_params(params)

    logits = neural_network_forward(x, prep)
    logits = jax.block_until_ready(logits)

    ref = reference_forward(x, params)
    assert logits.shape == (B, NUM_CLASSES)
    # bf16 weights/activations/output with f32 accumulation -> loosened tolerance vs f32 reference.
    assert jnp.allclose(logits, ref, atol=5e-2, rtol=5e-2), "mismatch vs reference"

    print("KERNEL_OK")
</pallas_src>

<mosaic_0001>
module attributes {stable_mosaic.version = 11 : i64} {
  func.func @mlp_kernel(%arg0: i32, %arg1: memref<8x63xf32, #tpu.memory_space<vmem>>, %arg2: memref<64x128xbf16, #tpu.memory_space<vmem>>, %arg3: memref<128x128xbf16, #tpu.memory_space<vmem>>, %arg4: memref<128x128xbf16, #tpu.memory_space<vmem>>, %arg5: memref<128x128xbf16, #tpu.memory_space<vmem>>, %arg6: memref<128x128xbf16, #tpu.memory_space<vmem>>, %arg7: memref<8x128xf32, #tpu.memory_space<vmem>>, %arg8: memref<8x128xbf16, #tpu.memory_space<vmem>>, %arg9: memref<8x64xbf16, #tpu.memory_space<vmem>>) attributes {dimension_semantics = [#tpu.dimension_semantics<parallel>], iteration_bounds = array<i64: 1>, scalar_prefetch = 0 : i64, scratch_operands = 1 : i64, tpu.core_type = #tpu.core_type<tc>, window_params = [{transform_indices = @transform_0, window_bounds = array<i64: 8, 63>}, {pipeline_mode = #tpu.pipeline_mode<synchronous>, transform_indices = @transform_1, window_bounds = array<i64: 64, 128>}, {pipeline_mode = #tpu.pipeline_mode<synchronous>, transform_indices = @transform_2, window_bounds = array<i64: 128, 128>}, {pipeline_mode = #tpu.pipeline_mode<synchronous>, transform_indices = @transform_3, window_bounds = array<i64: 128, 128>}, {pipeline_mode = #tpu.pipeline_mode<synchronous>, transform_indices = @transform_4, window_bounds = array<i64: 128, 128>}, {pipeline_mode = #tpu.pipeline_mode<synchronous>, transform_indices = @transform_5, window_bounds = array<i64: 128, 128>}, {pipeline_mode = #tpu.pipeline_mode<synchronous>, transform_indices = @transform_6, window_bounds = array<i64: 8, 128>}, {transform_indices = @transform_7, window_bounds = array<i64: 8, 128>}]} {
    %cst = arith.constant 1.000000e+00 : bf16
    %0 = vector.broadcast %cst : bf16 to vector<8x1xbf16>
    %c0 = arith.constant 0 : index
    %c63 = arith.constant 63 : index
    %1 = vector.load %arg9[%c0, %c63] : memref<8x64xbf16, #tpu.memory_space<vmem>>, vector<8x1xbf16>
    tpu.vector_store %arg9[%c0, %c63], %0 {strides = array<i32>} : memref<8x64xbf16, #tpu.memory_space<vmem>>, vector<8x1xbf16>,
    %c0_0 = arith.constant 0 : index
    %c0_1 = arith.constant 0 : index
    %2 = vector.load %arg1[%c0_0, %c0_1] : memref<8x63xf32, #tpu.memory_space<vmem>>, vector<8x63xf32>
    %3 = arith.truncf %2 : vector<8x63xf32> to vector<8x63xbf16>
    %c0_2 = arith.constant 0 : index
    %c0_3 = arith.constant 0 : index
    %4 = vector.load %arg9[%c0_2, %c0_3] : memref<8x64xbf16, #tpu.memory_space<vmem>>, vector<8x63xbf16>
    tpu.vector_store %arg9[%c0_2, %c0_3], %3 {strides = array<i32>} : memref<8x64xbf16, #tpu.memory_space<vmem>>, vector<8x63xbf16>,
    %c0_4 = arith.constant 0 : index
    %c0_5 = arith.constant 0 : index
    %5 = vector.load %arg9[%c0_4, %c0_5] : memref<8x64xbf16, #tpu.memory_space<vmem>>, vector<8x64xbf16>
    %c0_6 = arith.constant 0 : index
    %c0_7 = arith.constant 0 : index
    %6 = vector.load %arg7[%c0_6, %c0_7] : memref<8x128xf32, #tpu.memory_space<vmem>>, vector<8x128xf32>
    %c0_8 = arith.constant 0 : index
    %c0_9 = arith.constant 0 : index
    %7 = vector.load %arg2[%c0_8, %c0_9] : memref<64x128xbf16, #tpu.memory_space<vmem>>, vector<64x128xbf16>
    %cst_10 = arith.constant dense<0.000000e+00> : vector<8x128xf32>
    %8 = tpu.matmul %5, %7, %cst_10 {dimension_numbers = #tpu.dot_dimension_numbers<[1], [0], [0], [1], [0, 0, 1, 1], [], []>} : vector<8x64xbf16>, vector<64x128xbf16>, vector<8x128xf32> -> vector<8x128xf32>
    %cst_11 = arith.constant 0.000000e+00 : f32
    %9 = vector.broadcast %cst_11 : f32 to vector<8x128xf32>
    %10 = arith.maximumf %8, %9 : vector<8x128xf32>
    %11 = arith.truncf %10 : vector<8x128xf32> to vector<8x128xbf16>
    %c0_12 = arith.constant 0 : index
    %c0_13 = arith.constant 0 : index
    %12 = vector.load %arg3[%c0_12, %c0_13] : memref<128x128xbf16, #tpu.memory_space<vmem>>, vector<128x128xbf16>
    %cst_14 = arith.constant dense<0.000000e+00> : vector<8x128xf32>
    %13 = tpu.matmul %11, %12, %cst_14 {dimension_numbers = #tpu.dot_dimension_numbers<[1], [0], [0], [1], [0, 0, 1, 1], [], []>} : vector<8x128xbf16>, vector<128x128xbf16>, vector<8x128xf32> -> vector<8x128xf32>
    %14 = vector.extract_strided_slice %6 {offsets = [0, 0], sizes = [1, 128], strides = [1, 1]} : vector<8x128xf32> to vector<1x128xf32>
    %15 = vector.broadcast %14 : vector<1x128xf32> to vector<8x128xf32>
    %16 = arith.addf %13, %15 : vector<8x128xf32>
    %cst_15 = arith.constant 0.000000e+00 : f32
    %17 = vector.broadcast %cst_15 : f32 to vector<8x128xf32>
    %18 = arith.maximumf %16, %17 : vector<8x128xf32>
    %19 = arith.truncf %18 : vector<8x128xf32> to vector<8x128xbf16>
    %c0_16 = arith.constant 0 : index
    %c0_17 = arith.constant 0 : index
    %20 = vector.load %arg4[%c0_16, %c0_17] : memref<128x128xbf16, #tpu.memory_space<vmem>>, vector<128x128xbf16>
    %cst_18 = arith.constant dense<0.000000e+00> : vector<8x128xf32>
    %21 = tpu.matmul %19, %20, %cst_18 {dimension_numbers = #tpu.dot_dimension_numbers<[1], [0], [0], [1], [0, 0, 1, 1], [], []>} : vector<8x128xbf16>, vector<128x128xbf16>, vector<8x128xf32> -> vector<8x128xf32>
    %22 = vector.extract_strided_slice %6 {offsets = [1, 0], sizes = [1, 128], strides = [1, 1]} : vector<8x128xf32> to vector<1x128xf32>
    %23 = vector.broadcast %22 : vector<1x128xf32> to vector<8x128xf32>
    %24 = arith.addf %21, %23 : vector<8x128xf32>
    %cst_19 = arith.constant 0.000000e+00 : f32
    %25 = vector.broadcast %cst_19 : f32 to vector<8x128xf32>
    %26 = arith.maximumf %24, %25 : vector<8x128xf32>
    %27 = arith.truncf %26 : vector<8x128xf32> to vector<8x128xbf16>
    %c0_20 = arith.constant 0 : index
    %c0_21 = arith.constant 0 : index
    %28 = vector.load %arg5[%c0_20, %c0_21] : memref<128x128xbf16, #tpu.memory_space<vmem>>, vector<128x128xbf16>
    %cst_22 = arith.constant dense<0.000000e+00> : vector<8x128xf32>
    %29 = tpu.matmul %27, %28, %cst_22 {dimension_numbers = #tpu.dot_dimension_numbers<[1], [0], [0], [1], [0, 0, 1, 1], [], []>} : vector<8x128xbf16>, vector<128x128xbf16>, vector<8x128xf32> -> vector<8x128xf32>
    %30 = vector.extract_strided_slice %6 {offsets = [2, 0], sizes = [1, 128], strides = [1, 1]} : vector<8x128xf32> to vector<1x128xf32>
    %31 = vector.broadcast %30 : vector<1x128xf32> to vector<8x128xf32>
    %32 = arith.addf %29, %31 : vector<8x128xf32>
    %cst_23 = arith.constant 0.000000e+00 : f32
    %33 = vector.broadcast %cst_23 : f32 to vector<8x128xf32>
    %34 = arith.maximumf %32, %33 : vector<8x128xf32>
    %35 = arith.truncf %34 : vector<8x128xf32> to vector<8x128xbf16>
    %c0_24 = arith.constant 0 : index
    %c0_25 = arith.constant 0 : index
    %36 = vector.load %arg6[%c0_24, %c0_25] : memref<128x128xbf16, #tpu.memory_space<vmem>>, vector<128x128xbf16>
    %cst_26 = arith.constant dense<0.000000e+00> : vector<8x128xf32>
    %37 = tpu.matmul %35, %36, %cst_26 {dimension_numbers = #tpu.dot_dimension_numbers<[1], [0], [0], [1], [0, 0, 1, 1], [], []>} : vector<8x128xbf16>, vector<128x128xbf16>, vector<8x128xf32> -> vector<8x128xf32>
    %38 = vector.extract_strided_slice %6 {offsets = [3, 0], sizes = [1, 128], strides = [1, 1]} : vector<8x128xf32> to vector<1x128xf32>
    %39 = vector.broadcast %38 : vector<1x128xf32> to vector<8x128xf32>
    %40 = arith.addf %37, %39 : vector<8x128xf32>
    %41 = arith.truncf %40 : vector<8x128xf32> to vector<8x128xbf16>
    %c0_27 = arith.constant 0 : index
    %c0_28 = arith.constant 0 : index
    %42 = vector.load %arg8[%c0_27, %c0_28] : memref<8x128xbf16, #tpu.memory_space<vmem>>, vector<8x128xbf16>
    tpu.vector_store %arg8[%c0_27, %c0_28], %41 {strides = array<i32>} : memref<8x128xbf16, #tpu.memory_space<vmem>>, vector<8x128xbf16>,
    return
  }
  func.func @transform_0(%arg0: i32) -> (i32, i32) {
    %c0_i32 = arith.constant 0 : i32
    %c0_i32_0 = arith.constant 0 : i32
    return %arg0, %c0_i32 : i32, i32
  }
  func.func @transform_1(%arg0: i32) -> (i32, i32) {
    %c0_i32 = arith.constant 0 : i32
    %c0_i32_0 = arith.constant 0 : i32
    %c0_i32_1 = arith.constant 0 : i32
    return %c0_i32, %c0_i32_0 : i32, i32
  }
  func.func @transform_2(%arg0: i32) -> (i32, i32) {
    %c0_i32 = arith.constant 0 : i32
    %c0_i32_0 = arith.constant 0 : i32
    %c0_i32_1 = arith.constant 0 : i32
    return %c0_i32, %c0_i32_0 : i32, i32
  }
  func.func @transform_3(%arg0: i32) -> (i32, i32) {
    %c0_i32 = arith.constant 0 : i32
    %c0_i32_0 = arith.constant 0 : i32
    %c0_i32_1 = arith.constant 0 : i32
    return %c0_i32, %c0_i32_0 : i32, i32
  }
  func.func @transform_4(%arg0: i32) -> (i32, i32) {
    %c0_i32 = arith.constant 0 : i32
    %c0_i32_0 = arith.constant 0 : i32
    %c0_i32_1 = arith.constant 0 : i32
    return %c0_i32, %c0_i32_0 : i32, i32
  }
  func.func @transform_5(%arg0: i32) -> (i32, i32) {
    %c0_i32 = arith.constant 0 : i32
    %c0_i32_0 = arith.constant 0 : i32
    %c0_i32_1 = arith.constant 0 : i32
    return %c0_i32, %c0_i32_0 : i32, i32
  }
  func.func @transform_6(%arg0: i32) -> (i32, i32) {
    %c0_i32 = arith.constant 0 : i32
    %c0_i32_0 = arith.constant 0 : i32
    %c0_i32_1 = arith.constant 0 : i32
    return %c0_i32, %c0_i32_0 : i32, i32
  }
  func.func @transform_7(%arg0: i32) -> (i32, i32) {
    %c0_i32 = arith.constant 0 : i32
    %c0_i32_0 = arith.constant 0 : i32
    return %arg0, %c0_i32 : i32, i32
  }
}

</mosaic_0001>

<bundles_post_ra>
// kernel: tpu_custom_call.1
= control target key start
LH: loop header
LB: loop body
LE: loop exit
PB: predicated region body
PF: predicated region fallthrough
CT: control target
= control target key end

     0   :  { %12 = vsyncpa [#allocation4], 0  ;;  %s1241_s0 = inlined_call_operand.hbm [shape: f32[8,63], index: 0, kind: input, shape index: {}]   ;;  %s1242_s1 = inlined_call_operand.hbm [shape: bf16[64,128], index: 1, kind: input, shape index: {}]   ;;  %s1243_s2 = inlined_call_operand.hbm [shape: bf16[128,128], index: 2, kind: input, shape index: {}]   ;;  %s1244_s3 = inlined_call_operand.hbm [shape: bf16[128,128], index: 3, kind: input, shape index: {}]   ;;  %s1245_s4 = inlined_call_operand.hbm [shape: bf16[128,128], index: 4, kind: input, shape index: {}]   ;;  %s1246_s5 = inlined_call_operand.hbm [shape: bf16[128,128], index: 5, kind: input, shape index: {}]   ;;  %s1247_s6 = inlined_call_operand.vmem [shape: f32[8,128], index: 6, kind: input, shape index: {}]   ;;  %s1248_s7 = inlined_call_operand.hbm [shape: bf16[8,128], index: 7, kind: output, shape index: {}]  }
   0x1   :  { %13 = vsyncpa [#allocation7], 0 }
   0x2   :  { %14 = vsyncpa [#allocation10], 0 }
   0x3   :  { %15 = vsyncpa [#allocation13], 0 }
   0x4   :  { %16 = vsyncpa [#allocation5], 0  ;;  %s1035_s24 = smov [#allocation6]   ;;  %s871_s28 = scalar_lea.hbm %s1242_s1, 512 }
   0x5   :  { %s32_s25 = sshll.u32 %s1035_s24, 4  ;;  %p872_p0 = scmp.ne.s32.totalorder %s1242_s1, %s871_s28  ;;  %s33_s25 = int_to_ptr.vmem [resolvable:$true] %s32_s25 }
   0x6   :  { %p875_p1 = scmp.lt.u32.totalorder %s871_s28, %s1242_s1 }
   0x8   :  { %p877_p2 = pnand %p875_p1, %p872_p0 }
   0xa   :  { %880 = shalt.err (!%p877_p2)
}
   0xb   :  { %s881_s10 = scalar_lea.vmem %s33_s25, 512  ;;  %p886_p4 = scmp.lt.s32.totalorder %s33_s25, %s33_s25 }
   0xc   :  { %p882_p3 = scmp.ne.s32.totalorder %s33_s25, %s881_s10  ;;  %p887_p5 = scmp.lt.s32.totalorder %s881_s10, %s881_s10 }
   0xe   :  { %p888_p6 = por %p887_p5, %p886_p4 }
  0x10   :  { %p889_p7 = pnand %p888_p6, %p882_p3 }
  0x12   :  { %892 = shalt.err (!%p889_p7)
}
  0x13   :  { %s1036_s11 = smov 64   ;;  %s1037_s12 = smov 4  }
  0x14   :  { %38 = dma.hbm_to_vmem [thread:$0]  %s1242_s1, 512, %s33_s25, [#allocation7], %s1036_s11, %s1036_s11, %s1037_s12  }
  0x15   :  { %s1038_s15 = smov [#allocation9]   ;;  %s1039_s17 = smov [#allocation3]  }
  0x16   :  { %s56_s16 = sshll.u32 %s1038_s15, 4  ;;  %s23_s18 = sshll.u32 %s1039_s17, 4  ;;  %s57_s16 = int_to_ptr.vmem [resolvable:$true] %s56_s16  ;;  %s24_s18 = int_to_ptr.vmem [resolvable:$true] %s23_s18 }
  0x17   :  { %s893_s21 = scalar_lea.hbm %s1244_s3, 1024 }
  0x18   :  { %p894_p8 = scmp.ne.s32.totalorder %s1244_s3, %s893_s21  ;;  %p897_p9 = scmp.lt.u32.totalorder %s893_s21, %s1244_s3 }
  0x1a   :  { %p899_p10 = pnand %p897_p9, %p894_p8 }
  0x1c   :  { %902 = shalt.err (!%p899_p10)
}
  0x1d   :  { %s903_s1 = scalar_lea.vmem %s57_s16, 1024  ;;  %p908_p12 = scmp.lt.s32.totalorder %s57_s16, %s57_s16 }
  0x1e   :  { %p904_p11 = scmp.ne.s32.totalorder %s57_s16, %s903_s1  ;;  %p909_p13 = scmp.lt.s32.totalorder %s903_s1, %s903_s1 }
  0x20   :  { %p910_p0 = por %p909_p13, %p908_p12 }
  0x22   :  { %p911_p1 = pnand %p910_p0, %p904_p11 }
  0x24   :  { %914 = shalt.err (!%p911_p1)
}
  0x25   :  { %62 = dma.hbm_to_vmem [thread:$0]  %s1244_s3, 1024, %s57_s16, [#allocation10], %s1036_s11, %s1036_s11, %s1037_s12  }
  0x26   :  { %s915_s30 = scalar_lea.hbm %s1241_s0, 128 }
  0x27   :  { %p916_p2 = scmp.ne.s32.totalorder %s1241_s0, %s915_s30  ;;  %p919_p3 = scmp.lt.u32.totalorder %s915_s30, %s1241_s0 }
  0x29   :  { %p921_p4 = pnand %p919_p3, %p916_p2 }
  0x2b   :  { %924 = shalt.err (!%p921_p4)
}
  0x2c   :  { %s925_s14 = scalar_lea.vmem %s24_s18, 128  ;;  %p930_p6 = scmp.lt.s32.totalorder %s24_s18, %s24_s18 }
  0x2d   :  { %p926_p5 = scmp.ne.s32.totalorder %s24_s18, %s925_s14  ;;  %p931_p7 = scmp.lt.s32.totalorder %s925_s14, %s925_s14 }
  0x2f   :  { %p932_p8 = por %p931_p7, %p930_p6 }
  0x31   :  { %p933_p9 = pnand %p932_p8, %p926_p5 }
  0x33   :  { %936 = shalt.err (!%p933_p9)
}
  0x34   :  { %26 = dma.hbm_to_vmem [thread:$0]  %s1241_s0, 128, %s24_s18, [#allocation4]  }
  0x35   :  { %s1040_s16 = smov [#allocation8]   ;;  %s1041_s19 = smov [#allocation11]  }
  0x36   :  { %s44_s17 = sshll.u32 %s1040_s16, 4  ;;  %s68_s20 = sshll.u32 %s1041_s19, 4  ;;  %s45_s17 = int_to_ptr.vmem [resolvable:$true] %s44_s17  ;;  %s69_s20 = int_to_ptr.vmem [resolvable:$true] %s68_s20 }
  0x37   :  { %s937_s23 = scalar_lea.hbm %s1243_s2, 1024 }
  0x38   :  { %p938_p10 = scmp.ne.s32.totalorder %s1243_s2, %s937_s23  ;;  %p941_p11 = scmp.lt.u32.totalorder %s937_s23, %s1243_s2 }
  0x3a   :  { %p943_p12 = pnand %p941_p11, %p938_p10 }
  0x3c   :  { %946 = shalt.err (!%p943_p12)
}
  0x3d   :  { %s947_s0 = scalar_lea.vmem %s45_s17, 1024  ;;  %p952_p0 = scmp.lt.s32.totalorder %s45_s17, %s45_s17 }
  0x3e   :  { %p948_p13 = scmp.ne.s32.totalorder %s45_s17, %s947_s0  ;;  %p953_p1 = scmp.lt.s32.totalorder %s947_s0, %s947_s0 }
  0x40   :  { %p954_p2 = por %p953_p1, %p952_p0 }
  0x42   :  { %p955_p3 = pnand %p954_p2, %p948_p13 }
  0x44   :  { %958 = shalt.err (!%p955_p3)
}
  0x45   :  { %50 = dma.hbm_to_vmem [thread:$0]  %s1243_s2, 1024, %s45_s17, [#allocation7], %s1036_s11, %s1036_s11, %s1037_s12  }
  0x46   :  { %s959_s30 = scalar_lea.hbm %s1245_s4, 1024 }
  0x47   :  { %p960_p4 = scmp.ne.s32.totalorder %s1245_s4, %s959_s30  ;;  %p963_p5 = scmp.lt.u32.totalorder %s959_s30, %s1245_s4 }
  0x49   :  { %p965_p6 = pnand %p963_p5, %p960_p4 }
  0x4b   :  { %968 = shalt.err (!%p965_p6)
}
  0x4c   :  { %s969_s14 = scalar_lea.vmem %s69_s20, 1024  ;;  %p974_p8 = scmp.lt.s32.totalorder %s69_s20, %s69_s20 }
  0x4d   :  { %p970_p7 = scmp.ne.s32.totalorder %s69_s20, %s969_s14  ;;  %p975_p9 = scmp.lt.s32.totalorder %s969_s14, %s969_s14 }
  0x4f   :  { %p976_p10 = por %p975_p9, %p974_p8 }
  0x51   :  { %p977_p11 = pnand %p976_p10, %p970_p7 }
  0x53   :  { %980 = shalt.err (!%p977_p11)
}
  0x54   :  { %74 = dma.hbm_to_vmem [thread:$0]  %s1245_s4, 1024, %s69_s20, [#allocation10], %s1036_s11, %s1036_s11, %s1037_s12  }
  0x55   :  { %s1042_s15 = smov [#allocation12]   ;;  %s981_s21 = scalar_lea.hbm %s1246_s5, 1024 }
  0x56   :  { %s80_s16 = sshll.u32 %s1042_s15, 4  ;;  %p982_p12 = scmp.ne.s32.totalorder %s1246_s5, %s981_s21  ;;  %s81_s16 = int_to_ptr.vmem [resolvable:$true] %s80_s16 }
  0x57   :  { %p985_p13 = scmp.lt.u32.totalorder %s981_s21, %s1246_s5 }
  0x59   :  { %p987_p0 = pnand %p985_p13, %p982_p12 }
  0x5b   :  { %990 = shalt.err (!%p987_p0)
}
  0x5c   :  { %s991_s1 = scalar_lea.vmem %s81_s16, 1024  ;;  %p996_p2 = scmp.lt.s32.totalorder %s81_s16, %s81_s16 }
  0x5d   :  { %p992_p1 = scmp.ne.s32.totalorder %s81_s16, %s991_s1  ;;  %p997_p3 = scmp.lt.s32.totalorder %s991_s1, %s991_s1 }
  0x5f   :  { %p998_p4 = por %p997_p3, %p996_p2 }
  0x61   :  { %p999_p5 = pnand %p998_p4, %p992_p1 }
  0x63   :  { %1002 = shalt.err (!%p999_p5)
}
  0x64   :  { %86 = dma.hbm_to_vmem [thread:$0]  %s1246_s5, 1024, %s81_s16, [#allocation13], %s1036_s11, %s1036_s11, %s1037_s12  }
  0x65   :  { %1025 = dma.done.wait [#allocation4], 128  }
  0x66   :  { %1026 = vsyncadd [#allocation4], 4294967168 }
  0x67   :  { %1027 = dma.done.wait [#allocation7], 1536  }
  0x68   :  { %1028 = vsyncadd [#allocation7], 4294965760 }
  0x69   :  { %1029 = dma.done.wait [#allocation10], 2048  }
  0x6a   :  { %1030 = vsyncadd [#allocation10], 4294965248 }
  0x6b   :  { %1031 = dma.done.wait [#allocation13], 1024  }
  0x6c   :  { %1032 = vsyncadd [#allocation13], 4294966272  ;;  %vm109_vm0 = vcmask 519672   ;;  %v1043_v0 = vmov 0.0   ;;  %vm1044_vm1 = vmmov 0   ;;  %v835_v2 = vld [vmem:[#allocation6] sm:$0xff]   ;;  %v211_v37 = vlaneseq }
  0x6d   :  { %731 = vmatprep.subr.bf16.mxu0 %v1043_v0  ;;  %739 = vmatprep.mubr.msk.bf16.mxu0 %vm1044_vm1, %v1043_v0  ;;  %v1045_v1 = vmov 1065369472   ;;  %v836_v3 = vld [vmem:[#allocation6 + $0x8] sm:$0xff]   ;;  %v111_v4 = vld [vmem:[#allocation3] sm:$0xff]  ;;  %vm113_vm2 = vcmask 510976   ;;  %v839_v6 = vld [vmem:[#allocation8] sm:$0xff]  }
  0x6e   :  { %110 = vst.msk [vmem:[#allocation2] sm:$0xf] %vm109_vm0, %v1045_v1  ;;  %743 = vmatprep.subr.bf16.mxu1 %v1043_v0  ;;  %759 = vmatprep.mubr.msk.bf16.mxu1 %vm1044_vm1, %v1043_v0  ;;  %v112_v5 = vpack.c.bf16 %v111_v4, %v111_v4  ;;  %v837_v7 = vld [vmem:[#allocation6 + $0x10] sm:$0xff]   ;;  %v840_v8 = vld [vmem:[#allocation8 + $0x8] sm:$0xff]   ;;  %v838_v9 = vld [vmem:[#allocation6 + $0x18] sm:$0xff]   ;;  %vm149_vm3 = vcmask 523264  }
  0x6f   :  { %732 = vmatpush3.bf16.msra.mxu0 %v835_v2  ;;  %744 = vmatpush3.bf16.msra.mxu1 %v839_v6  ;;  %v841_v10 = vld [vmem:[#allocation8 + $0x10] sm:$0xff]   ;;  %v842_v11 = vld [vmem:[#allocation8 + $0x18] sm:$0xff]   ;;  %v843_v13 = vld [vmem:[#allocation8 + $0x20] sm:$0xff]   ;;  %v1210_v38 = vshrl.u32 %v211_v37, 7 }
  0x70   :  { %733 = vmatprep.subr.bf16.mxu0 %v1043_v0  ;;  %114 = vst.msk [vmem:[#allocation2] sm:$0xf] %vm113_vm2, %v112_v5  ;;  %745 = vmatprep.subr.bf16.mxu1 %v1043_v0  ;;  %v844_v14 = vld [vmem:[#allocation8 + $0x28] sm:$0xff]   ;;  %v845_v15 = vld [vmem:[#allocation8 + $0x30] sm:$0xff]   ;;  %v846_v16 = vld [vmem:[#allocation8 + $0x38] sm:$0xff]  }
  0x71   :  { %v847_v17 = vld [vmem:[#allocation9] sm:$0xff]   ;;  %v848_v18 = vld [vmem:[#allocation9 + $0x8] sm:$0xff]   ;;  %v849_v19 = vld [vmem:[#allocation9 + $0x10] sm:$0xff]   ;;  %v213_v39 = vsub.s32 0, %v1210_v38  ;;  %v323_v57 = vsub.s32 1, %v1210_v38  ;;  %v433_v5 = vsub.s32 2, %v1210_v38 }
  0x72   :  { %v850_v20 = vld [vmem:[#allocation9 + $0x18] sm:$0xff]   ;;  %v851_v21 = vld [vmem:[#allocation9 + $0x20] sm:$0xff]   ;;  %v852_v22 = vld [vmem:[#allocation9 + $0x28] sm:$0xff]  }
  0x73   :  { %734 = vmatpush3.bf16.msra.mxu0 %v836_v3  ;;  %746 = vmatpush3.bf16.msra.mxu1 %v840_v8  ;;  %v853_v29 = vld [vmem:[#allocation9 + $0x30] sm:$0xff]   ;;  %v854_v30 = vld [vmem:[#allocation9 + $0x38] sm:$0xff]   ;;  %v855_v31 = vld [vmem:[#allocation11] sm:$0xff]  }
  0x74   :  { %735 = vmatprep.subr.bf16.mxu0 %v1043_v0  ;;  %747 = vmatprep.subr.bf16.mxu1 %v1043_v0  ;;  %v856_v32 = vld [vmem:[#allocation11 + $0x8] sm:$0xff]   ;;  %v857_v33 = vld [vmem:[#allocation11 + $0x10] sm:$0xff]   ;;  %v858_v34 = vld [vmem:[#allocation11 + $0x18] sm:$0xff]  }
  0x75   :  { %v859_v35 = vld [vmem:[#allocation11 + $0x20] sm:$0xff]   ;;  %v860_v36 = vld [vmem:[#allocation11 + $0x28] sm:$0xff]   ;;  %v116_v40 = vld [vmem:[%s1247_s6] sm:$0xff]  ;;  %s1046_s6 = smov [#allocation14]  }
  0x76   :  { %v214_v41 = vrot.slane %v116_v40, %v213_v39  ;;  %v861_v49 = vld [vmem:[#allocation11 + $0x30] sm:$0xff]   ;;  %v862_v50 = vld [vmem:[#allocation11 + $0x38] sm:$0xff]   ;;  %v863_v51 = vld [vmem:[#allocation12] sm:$0xff]   ;;  %v324_v58 = vrot.slane %v116_v40, %v323_v57  ;;  %v434_v6 = vrot.slane %v116_v40, %v433_v5  ;;  %s641_s12 = sshll.u32 %s1046_s6, 4  ;;  %s642_s12 = int_to_ptr.vmem [resolvable:$true] %s641_s12 }
  0x77   :  { %736 = vmatpush3.bf16.msra.mxu0 %v837_v7  ;;  %v115_v12 = vld [vmem:[#allocation2] sm:$0xf]  ;;  %748 = vmatpush3.bf16.msra.mxu1 %v841_v10  ;;  %v864_v52 = vld [vmem:[#allocation12 + $0x8] sm:$0xff]   ;;  %v866_v54 = vld [vmem:[#allocation12 + $0x18] sm:$0xff]   ;;  %s1003_s25 = scalar_lea.vmem %s642_s12, 64  ;;  %p1008_p7 = scmp.lt.s32.totalorder %s642_s12, %s642_s12 }
  0x78   :  { %737 = vmatprep.subr.bf16.mxu0 %v1043_v0  ;;  %749 = vmatprep.subr.bf16.mxu1 %v1043_v0  ;;  %v865_v53 = vld [vmem:[#allocation12 + $0x10] sm:$0xff]   ;;  %v867_v55 = vld [vmem:[#allocation12 + $0x20] sm:$0xff]   ;;  %v868_v56 = vld [vmem:[#allocation12 + $0x28] sm:$0xff]   ;;  %p1004_p6 = scmp.ne.s32.totalorder %s642_s12, %s1003_s25  ;;  %p1009_p8 = scmp.lt.s32.totalorder %s1003_s25, %s1003_s25 }
  0x79   :  { %v869_v3 = vld [vmem:[#allocation12 + $0x30] sm:$0xff]   ;;  %v870_v4 = vld [vmem:[#allocation12 + $0x38] sm:$0xff]  }
  0x7a   :  { %p1010_p9 = por %p1009_p8, %p1008_p7 }
  0x7b   :  { %738 = vmatpush3.bf16.msra.mxu0 %v838_v9  ;;  %750 = vmatpush3.bf16.msra.mxu1 %v842_v11 }
  0x7c   :  { %763 = vmatprep.subr.bf16.mxu0 %v1043_v0  ;;  %751 = vmatprep.subr.bf16.mxu1 %v1043_v0  ;;  %p1011_p10 = pnand %p1010_p9, %p1004_p6 }
  0x7e   :  { %740 = vmatmul.mubr.msk.bf16.vlgmr.msra.gmra.mrb[0].mxu0 %vm149_vm3, %v115_v12 }
  0x7f   :  { %779 = vmatprep.mubr.msk.bf16.mxu0 %vm1044_vm1, %v1043_v0  ;;  %752 = vmatpush3.bf16.msra.mxu1 %v843_v13 }
  0x80   :  { %753 = vmatprep.subr.bf16.mxu1 %v1043_v0  ;;  %764 = vmatpush3.bf16.msra.mxu0 %v847_v17 }
  0x81   :  { %765 = vmatprep.subr.bf16.mxu0 %v1043_v0 }
  0x83   :  { %754 = vmatpush3.bf16.msra.mxu1 %v844_v14  ;;  %v543_v14 = vsub.s32 3, %v1210_v38 }
  0x84   :  { %755 = vmatprep.subr.bf16.mxu1 %v1043_v0  ;;  %766 = vmatpush3.bf16.msra.mxu0 %v848_v18 }
  0x85   :  { %767 = vmatprep.subr.bf16.mxu0 %v1043_v0 }
  0x87   :  { %756 = vmatpush3.bf16.msra.mxu1 %v845_v15  ;;  %v544_v15 = vrot.slane %v116_v40, %v543_v14 }
  0x88   :  { %757 = vmatprep.subr.bf16.mxu1 %v1043_v0  ;;  %768 = vmatpush3.bf16.msra.mxu0 %v849_v19 }
  0x89   :  { %769 = vmatprep.subr.bf16.mxu0 %v1043_v0 }
  0x8b   :  { %758 = vmatpush3.bf16.msra.mxu1 %v846_v16 }
  0x8c   :  { %783 = vmatprep.subr.bf16.mxu1 %v1043_v0  ;;  %770 = vmatpush3.bf16.msra.mxu0 %v850_v20 }
  0x8d   :  { %771 = vmatprep.subr.bf16.mxu0 %v1043_v0 }
  0x90   :  { %772 = vmatpush3.bf16.msra.mxu0 %v851_v21 }
  0x91   :  { %773 = vmatprep.subr.bf16.mxu0 %v1043_v0 }
  0x94   :  { %774 = vmatpush3.bf16.msra.mxu0 %v852_v22 }
  0x95   :  { %775 = vmatprep.subr.bf16.mxu0 %v1043_v0 }
  0x98   :  { %776 = vmatpush3.bf16.msra.mxu0 %v853_v29 }
  0x99   :  { %777 = vmatprep.subr.bf16.mxu0 %v1043_v0 }
  0x9c   :  { %778 = vmatpush3.bf16.msra.mxu0 %v854_v30 }
  0x9d   :  { %803 = vmatprep.subr.bf16.mxu0 %v1043_v0 }
 0x151   :  { %v187_v23 = vpop.f32.mrb[0].mxu0 }
 0x152   :  { %v193_v24 = vmax.f32 %v187_v23, 0.0  ;;  %v741_v25 = vpop.f32.mrb[1].mxu0 }
 0x153   :  { %v190_v26 = vpop.f32.mrb[2].mxu0 }
 0x154   :  { %v194_v27 = vpack.c.bf16 %v193_v24, %v193_v24  ;;  %v742_v28 = vpop.f32.mrb[3].mxu0 }
 0x156   :  { %760 = vmatmul.mubr.bf16.vlgmr.msra.gmra.mrb[0].mxu1 %v194_v27 }
 0x157   :  { %799 = vmatprep.mubr.msk.bf16.mxu1 %vm1044_vm1, %v1043_v0  ;;  %784 = vmatpush3.bf16.msra.mxu1 %v855_v31 }
 0x158   :  { %785 = vmatprep.subr.bf16.mxu1 %v1043_v0 }
 0x15b   :  { %786 = vmatpush3.bf16.msra.mxu1 %v856_v32 }
 0x15c   :  { %787 = vmatprep.subr.bf16.mxu1 %v1043_v0 }
 0x15f   :  { %788 = vmatpush3.bf16.msra.mxu1 %v857_v33 }
 0x160   :  { %789 = vmatprep.subr.bf16.mxu1 %v1043_v0 }
 0x163   :  { %790 = vmatpush3.bf16.msra.mxu1 %v858_v34 }
 0x164   :  { %791 = vmatprep.subr.bf16.mxu1 %v1043_v0 }
 0x167   :  { %792 = vmatpush3.bf16.msra.mxu1 %v859_v35 }
 0x168   :  { %793 = vmatprep.subr.bf16.mxu1 %v1043_v0 }
 0x16b   :  { %794 = vmatpush3.bf16.msra.mxu1 %v860_v36 }
 0x16c   :  { %795 = vmatprep.subr.bf16.mxu1 %v1043_v0 }
 0x16f   :  { %796 = vmatpush3.bf16.msra.mxu1 %v861_v49 }
 0x170   :  { %797 = vmatprep.subr.bf16.mxu1 %v1043_v0 }
 0x173   :  { %798 = vmatpush3.bf16.msra.mxu1 %v862_v50 }
 0x229   :  { %v297_v42 = vpop.f32.mrb[0].mxu1 }
 0x22a   :  { %v298_v43 = vadd.f32 %v297_v42, %v214_v41  ;;  %v761_v44 = vpop.f32.mrb[1].mxu1 }
 0x22b   :  { %v300_v45 = vpop.f32.mrb[2].mxu1 }
 0x22c   :  { %v303_v46 = vmax.f32 %v298_v43, 0.0  ;;  %v762_v47 = vpop.f32.mrb[3].mxu1 }
 0x22e   :  { %v304_v48 = vpack.c.bf16 %v303_v46, %v303_v46 }
 0x230   :  { %780 = vmatmul.mubr.bf16.vlgmr.msra.gmra.mrb[4].mxu0 %v304_v48 }
 0x231   :  { %819 = vmatprep.mubr.msk.bf16.mxu0 %vm1044_vm1, %v1043_v0  ;;  %804 = vmatpush3.bf16.msra.mxu0 %v863_v51 }
 0x232   :  { %805 = vmatprep.subr.bf16.mxu0 %v1043_v0 }
 0x235   :  { %806 = vmatpush3.bf16.msra.mxu0 %v864_v52 }
 0x236   :  { %807 = vmatprep.subr.bf16.mxu0 %v1043_v0 }
 0x239   :  { %808 = vmatpush3.bf16.msra.mxu0 %v865_v53 }
 0x23a   :  { %809 = vmatprep.subr.bf16.mxu0 %v1043_v0 }
 0x23d   :  { %810 = vmatpush3.bf16.msra.mxu0 %v866_v54 }
 0x23e   :  { %811 = vmatprep.subr.bf16.mxu0 %v1043_v0 }
 0x241   :  { %812 = vmatpush3.bf16.msra.mxu0 %v867_v55 }
 0x242   :  { %813 = vmatprep.subr.bf16.mxu0 %v1043_v0 }
 0x245   :  { %814 = vmatpush3.bf16.msra.mxu0 %v868_v56 }
 0x246   :  { %815 = vmatprep.subr.bf16.mxu0 %v1043_v0 }
 0x249   :  { %816 = vmatpush3.bf16.msra.mxu0 %v869_v3 }
 0x24a   :  { %817 = vmatprep.subr.bf16.mxu0 %v1043_v0 }
 0x24d   :  { %818 = vmatpush3.bf16.msra.mxu0 %v870_v4 }
 0x303   :  { %v407_v59 = vpop.f32.mrb[4].mxu0 }
 0x304   :  { %v408_v60 = vadd.f32 %v407_v59, %v324_v58  ;;  %v781_v61 = vpop.f32.mrb[5].mxu0 }
 0x305   :  { %v410_v62 = vpop.f32.mrb[6].mxu0 }
 0x306   :  { %v413_v63 = vmax.f32 %v408_v60, 0.0  ;;  %v782_v1 = vpop.f32.mrb[7].mxu0 }
 0x308   :  { %v414_v2 = vpack.c.bf16 %v413_v63, %v413_v63 }
 0x30a   :  { %800 = vmatmul.mubr.bf16.vlgmr.msra.gmra.mrb[4].mxu1 %v414_v2 }
 0x3dd   :  { %v517_v7 = vpop.f32.mrb[4].mxu1 }
 0x3de   :  { %v518_v8 = vadd.f32 %v517_v7, %v434_v6  ;;  %v801_v9 = vpop.f32.mrb[5].mxu1 }
 0x3df   :  { %v520_v10 = vpop.f32.mrb[6].mxu1 }
 0x3e0   :  { %v523_v11 = vmax.f32 %v518_v8, 0.0  ;;  %v802_v12 = vpop.f32.mrb[7].mxu1 }
 0x3e2   :  { %v524_v13 = vpack.c.bf16 %v523_v11, %v523_v11 }
 0x3e4   :  { %820 = vmatmul.mubr.bf16.vlgmr.msra.gmra.mrb[8].mxu0 %v524_v13 }
 0x4b7   :  { %v627_v16 = vpop.f32.mrb[8].mxu0 }
 0x4b8   :  { %v628_v0 = vadd.f32 %v627_v16, %v544_v15  ;;  %v821_v17 = vpop.f32.mrb[9].mxu0 }
 0x4b9   :  { %v630_v18 = vpop.f32.mrb[10].mxu0 }
 0x4ba   :  { %v633_v19 = vpack.c.bf16 %v628_v0, %v628_v0  ;;  %v822_v20 = vpop.f32.mrb[11].mxu0 }
 0x4bc   :  { %634 = vst [vmem:[#allocation14] sm:$0xf] %v633_v19 }
 0x4bd   :  { %1014 = shalt.err (!%p1011_p10)
}
 0x4be   :  { %s1015_s27 = scalar_lea.hbm %s1248_s7, 64 }
 0x4bf   :  { %p1016_p11 = scmp.ne.s32.totalorder %s1248_s7, %s1015_s27  ;;  %p1019_p12 = scmp.lt.u32.totalorder %s1015_s27, %s1248_s7 }
 0x4c1   :  { %p1021_p13 = pnand %p1019_p12, %p1016_p11 }
 0x4c3   :  { %1024 = shalt.err (!%p1021_p13)
}
 0x4c4   :  { %644 = dma.vmem_to_hbm [thread:$0]  %s642_s12, 64, %s1248_s7, [#allocation5]  }
 0x4c5   :  { %1033 = dma.done.wait [#allocation5], 64  }
 0x4c6   :  { %1034 = vsyncadd [#allocation5], 4294967232 }
 0x4c7   :  { %648 = vsyncpa [#allocation4], 1 }
 0x4c8   :  { %649 = vsyncpa [#allocation7], 1 }
 0x4c9   :  { %650 = vsyncpa [#allocation10], 1 }
 0x4ca   :  { %651 = vsyncpa [#allocation13], 1 }
 0x4cb   :  { %652 = vsyncpa [#allocation5], 1 }

</bundles_post_ra>
